<compile_context>
chip_gen: v7x
topology: tpu7x:2x2x1
jax: 0.10.0
libtpu: 0.0.40
codegen_flags: <defaults>
</compile_context>

<pallas_src>
import functools

import jax
import jax.numpy as jnp
from jax.experimental import pallas as pl
from jax.experimental.pallas import tpu as pltpu


def _char_encoder_kernel(ids_ref, table_ref, w_ref, b_ref, out_ref):
    # ids_ref:   (TN, W)   int32  - char ids for TN words
    # table_ref: (V, E)    f32    - embedding table (padding_idx row is zero)
    # w_ref:     (F, E, H) f32    - conv weight, w_ref[f][e, h] == torch_weight[h, e, f]
    # b_ref:     (1, H)    f32    - conv bias
    # out_ref:   (TN, H)   f32    - max-pooled conv features per word
    TN, W = ids_ref.shape
    V, E = table_ref.shape
    F = w_ref.shape[0]
    H = out_ref.shape[1]
    p = (F - 1) // 2  # 'same' padding (odd F)

    ids = ids_ref[...]                                              # (TN, W)
    table = table_ref[...]                                          # (V, E)
    vocab_iota = jax.lax.broadcasted_iota(jnp.int32, (TN, V), 1)    # hoisted out of loops

    # Embedding gather, one char position at a time: exact one-hot row-select on the MXU.
    # Out-of-range ids yield all-zero rows (nn.Embedding would raise instead).
    emb = []
    for w in range(W):
        onehot = (ids[:, w:w + 1] == vocab_iota).astype(jnp.float32)         # (TN, V)
        emb.append(jnp.dot(onehot, table, preferred_element_type=jnp.float32))  # (TN, E)

    bias_full = jnp.broadcast_to(b_ref[...], (TN, H)).astype(jnp.float32)    # hoisted broadcast

    # Conv1d (cross-correlation) over the word axis + running max over output positions.
    result = None
    for t in range(W):  # output length == W because F is odd
        acc = bias_full
        for f in range(F):
            src = t + f - p
            if 0 <= src < W:
                acc = acc + jnp.dot(emb[src], w_ref[f],
                                    preferred_element_type=jnp.float32)      # (TN, H)
        result = acc if result is None else jnp.maximum(result, acc)
    out_ref[...] = result


@functools.partial(jax.jit, static_argnames=("block_words",))
def char_encoder_forward(chars, table, conv_weight, conv_bias, *, block_words=256):
    """chars: (B, S, W) int32; table: (V, E) f32; conv_weight: (H, E, F) f32; conv_bias: (H,).
    Returns (S, B, H) f32, matching char_encoder_fn.forward."""
    B, S, W = chars.shape
    V, E = table.shape
    H, E2, F = conv_weight.shape
    assert E2 == E
    if F % 2 == 0:
        # PyTorch's .view(batch, sent, hidden, word_len) requires conv_out_len == word_len.
        raise ValueError("filter_size must be odd")

    N = B * S
    TN = min(block_words, N)
    TN = max(8, (TN // 8) * 8)                 # sublane-aligned block of words
    n_blocks = (N + TN - 1) // TN
    N_pad = n_blocks * TN

    ids = chars.reshape(N, W).astype(jnp.int32)
    if N_pad != N:
        ids = jnp.pad(ids, ((0, N_pad - N), (0, 0)))   # pad with id 0; rows sliced off below

    w_r = jnp.transpose(conv_weight, (2, 1, 0)).astype(jnp.float32)  # (F, E, H)
    b_r = conv_bias.reshape(1, H).astype(jnp.float32)
    table = table.astype(jnp.float32)

    flops = 2 * N_pad * W * V * E + 2 * N_pad * W * F * E * H
    bytes_accessed = 4 * (ids.size + table.size + w_r.size + b_r.size + N_pad * H)
    cost = pl.CostEstimate(flops=flops, transcendentals=0, bytes_accessed=bytes_accessed)

    out = pl.pallas_call(
        _char_encoder_kernel,
        out_shape=jax.ShapeDtypeStruct((N_pad, H), jnp.float32),
        grid_spec=pltpu.PrefetchScalarGridSpec(
            num_scalar_prefetch=0,
            grid=(n_blocks,),
            in_specs=[
                pl.BlockSpec((TN, W), lambda i: (i, 0)),      # char ids per word block
                pl.BlockSpec((V, E), lambda i: (0, 0)),       # embedding table (resident)
                pl.BlockSpec((F, E, H), lambda i: (0, 0, 0)),  # conv weights (resident)
                pl.BlockSpec((1, H), lambda i: (0, 0)),       # conv bias (resident)
            ],
            out_specs=pl.BlockSpec((TN, H), lambda i: (i, 0)),
        ),
        compiler_params=pltpu.CompilerParams(
            dimension_semantics=("parallel",),                # 2x on v7x megacore
        ),
        cost_estimate=cost,
    )(ids, table, w_r, b_r)

    out = out[:N].reshape(B, S, H)            # (B, S, H)
    return jnp.transpose(out, (1, 0, 2))      # (S, B, H)  == .permute(1, 0, 2)


def _reference_forward(chars, table, conv_weight, conv_bias):
    """Pure-JAX reference mirroring the PyTorch module."""
    B, S, W = chars.shape
    V, E = table.shape
    H, _, F = conv_weight.shape
    p = (F - 1) // 2
    emb = table[chars]                                             # (B, S, W, E)
    x = emb.reshape(B * S, W, E).transpose(0, 2, 1)                # (N, E, W)
    conv = jax.lax.conv_general_dilated(
        x, conv_weight, window_strides=(1,), padding=[(p, p)],
        dimension_numbers=("NCH", "OIH", "NCH"))                   # (N, H, W)
    conv = conv + conv_bias[None, :, None]
    pooled = conv.reshape(B, S, H, W).max(axis=-1)                 # (B, S, H)
    return pooled.transpose(1, 0, 2)                               # (S, B, H)


if __name__ == "__main__":
    # Small shapes consistent with the module:
    # batch=2, sent_len=8, word_len=8, char vocab=64, embedding_dim=32, hidden_dim=32, filter=3.
    batch, sent_len, word_len = 2, 8, 8
    vocab_size, embedding_dim, hidden_dim, filter_size = 64, 32, 32, 3
    pad_idx = 0

    key = jax.random.PRNGKey(0)
    k_ids, k_emb, k_w, k_b = jax.random.split(key, 4)

    chars = jax.random.randint(k_ids, (batch, sent_len, word_len), 0, vocab_size,
                               dtype=jnp.int32)
    # Exercise padding_idx.
    chars = chars.at[0, 0, :3].set(pad_idx)
    chars = chars.at[1, 3, 5:].set(pad_idx)

    # nn.Embedding init (N(0,1)) with padding_idx row zeroed.
    table = jax.random.normal(k_emb, (vocab_size, embedding_dim), dtype=jnp.float32)
    table = table.at[pad_idx].set(0.0)

    # nn.Conv1d-style init.
    k_scale = 1.0 / jnp.sqrt(embedding_dim * filter_size)
    conv_weight = jax.random.uniform(k_w, (hidden_dim, embedding_dim, filter_size),
                                     minval=-k_scale, maxval=k_scale, dtype=jnp.float32)
    conv_bias = jax.random.uniform(k_b, (hidden_dim,),
                                   minval=-k_scale, maxval=k_scale, dtype=jnp.float32)

    # block_words=8 -> grid=(2,) even at these toy shapes (exercises tiling/pipelining).
    out = char_encoder_forward(chars, table, conv_weight, conv_bias, block_words=8)
    out = jax.block_until_ready(out)

    ref = _reference_forward(chars, table, conv_weight, conv_bias)
    assert out.shape == (sent_len, batch, hidden_dim), out.shape
    assert jnp.allclose(out, ref, atol=1e-4, rtol=1e-4), "mismatch vs JAX reference"

    print("KERNEL_OK")
</pallas_src>

<mosaic_0001>
module attributes {stable_mosaic.version = 11 : i64} {
  func.func @_char_encoder_kernel(%arg0: i32, %arg1: memref<8x8xi32, #tpu.memory_space<vmem>>, %arg2: memref<64x32xf32, #tpu.memory_space<vmem>>, %arg3: memref<3x32x32xf32, #tpu.memory_space<vmem>>, %arg4: memref<1x32xf32, #tpu.memory_space<vmem>>, %arg5: memref<8x32xf32, #tpu.memory_space<vmem>>) attributes {dimension_semantics = [#tpu.dimension_semantics<parallel>], iteration_bounds = array<i64: 2>, scalar_prefetch = 0 : i64, scratch_operands = 0 : i64, tpu.core_type = #tpu.core_type<tc>, window_params = [{transform_indices = @transform_0, window_bounds = array<i64: 8, 8>}, {pipeline_mode = #tpu.pipeline_mode<synchronous>, transform_indices = @transform_1, window_bounds = array<i64: 64, 32>}, {pipeline_mode = #tpu.pipeline_mode<synchronous>, transform_indices = @transform_2, window_bounds = array<i64: 3, 32, 32>}, {pipeline_mode = #tpu.pipeline_mode<synchronous>, transform_indices = @transform_3, window_bounds = array<i64: 1, 32>}, {transform_indices = @transform_4, window_bounds = array<i64: 8, 32>}]} {
    %c0 = arith.constant 0 : index
    %c0_0 = arith.constant 0 : index
    %0 = vector.load %arg1[%c0, %c0_0] : memref<8x8xi32, #tpu.memory_space<vmem>>, vector<8x8xi32>
    %c0_1 = arith.constant 0 : index
    %c0_2 = arith.constant 0 : index
    %1 = vector.load %arg2[%c0_1, %c0_2] : memref<64x32xf32, #tpu.memory_space<vmem>>, vector<64x32xf32>
    %2 = tpu.iota {dimensions = array<i32: 1>} : vector<8x64xi32>
    %3 = vector.extract_strided_slice %0 {offsets = [0, 0], sizes = [8, 1], strides = [1, 1]} : vector<8x8xi32> to vector<8x1xi32>
    %4 = vector.broadcast %3 : vector<8x1xi32> to vector<8x64xi32>
    %5 = arith.cmpi eq, %4, %2 : vector<8x64xi32>
    %6 = arith.extui %5 : vector<8x64xi1> to vector<8x64xi32>
    %7 = arith.sitofp %6 : vector<8x64xi32> to vector<8x64xf32>
    %cst = arith.constant dense<0.000000e+00> : vector<8x32xf32>
    %8 = tpu.matmul %7, %1, %cst {dimension_numbers = #tpu.dot_dimension_numbers<[1], [0], [0], [1], [0, 0, 1, 1], [], []>} : vector<8x64xf32>, vector<64x32xf32>, vector<8x32xf32> -> vector<8x32xf32>
    %9 = vector.extract_strided_slice %0 {offsets = [0, 1], sizes = [8, 1], strides = [1, 1]} : vector<8x8xi32> to vector<8x1xi32>
    %10 = vector.broadcast %9 : vector<8x1xi32> to vector<8x64xi32>
    %11 = arith.cmpi eq, %10, %2 : vector<8x64xi32>
    %12 = arith.extui %11 : vector<8x64xi1> to vector<8x64xi32>
    %13 = arith.sitofp %12 : vector<8x64xi32> to vector<8x64xf32>
    %cst_3 = arith.constant dense<0.000000e+00> : vector<8x32xf32>
    %14 = tpu.matmul %13, %1, %cst_3 {dimension_numbers = #tpu.dot_dimension_numbers<[1], [0], [0], [1], [0, 0, 1, 1], [], []>} : vector<8x64xf32>, vector<64x32xf32>, vector<8x32xf32> -> vector<8x32xf32>
    %15 = vector.extract_strided_slice %0 {offsets = [0, 2], sizes = [8, 1], strides = [1, 1]} : vector<8x8xi32> to vector<8x1xi32>
    %16 = vector.broadcast %15 : vector<8x1xi32> to vector<8x64xi32>
    %17 = arith.cmpi eq, %16, %2 : vector<8x64xi32>
    %18 = arith.extui %17 : vector<8x64xi1> to vector<8x64xi32>
    %19 = arith.sitofp %18 : vector<8x64xi32> to vector<8x64xf32>
    %cst_4 = arith.constant dense<0.000000e+00> : vector<8x32xf32>
    %20 = tpu.matmul %19, %1, %cst_4 {dimension_numbers = #tpu.dot_dimension_numbers<[1], [0], [0], [1], [0, 0, 1, 1], [], []>} : vector<8x64xf32>, vector<64x32xf32>, vector<8x32xf32> -> vector<8x32xf32>
    %21 = vector.extract_strided_slice %0 {offsets = [0, 3], sizes = [8, 1], strides = [1, 1]} : vector<8x8xi32> to vector<8x1xi32>
    %22 = vector.broadcast %21 : vector<8x1xi32> to vector<8x64xi32>
    %23 = arith.cmpi eq, %22, %2 : vector<8x64xi32>
    %24 = arith.extui %23 : vector<8x64xi1> to vector<8x64xi32>
    %25 = arith.sitofp %24 : vector<8x64xi32> to vector<8x64xf32>
    %cst_5 = arith.constant dense<0.000000e+00> : vector<8x32xf32>
    %26 = tpu.matmul %25, %1, %cst_5 {dimension_numbers = #tpu.dot_dimension_numbers<[1], [0], [0], [1], [0, 0, 1, 1], [], []>} : vector<8x64xf32>, vector<64x32xf32>, vector<8x32xf32> -> vector<8x32xf32>
    %27 = vector.extract_strided_slice %0 {offsets = [0, 4], sizes = [8, 1], strides = [1, 1]} : vector<8x8xi32> to vector<8x1xi32>
    %28 = vector.broadcast %27 : vector<8x1xi32> to vector<8x64xi32>
    %29 = arith.cmpi eq, %28, %2 : vector<8x64xi32>
    %30 = arith.extui %29 : vector<8x64xi1> to vector<8x64xi32>
    %31 = arith.sitofp %30 : vector<8x64xi32> to vector<8x64xf32>
    %cst_6 = arith.constant dense<0.000000e+00> : vector<8x32xf32>
    %32 = tpu.matmul %31, %1, %cst_6 {dimension_numbers = #tpu.dot_dimension_numbers<[1], [0], [0], [1], [0, 0, 1, 1], [], []>} : vector<8x64xf32>, vector<64x32xf32>, vector<8x32xf32> -> vector<8x32xf32>
    %33 = vector.extract_strided_slice %0 {offsets = [0, 5], sizes = [8, 1], strides = [1, 1]} : vector<8x8xi32> to vector<8x1xi32>
    %34 = vector.broadcast %33 : vector<8x1xi32> to vector<8x64xi32>
    %35 = arith.cmpi eq, %34, %2 : vector<8x64xi32>
    %36 = arith.extui %35 : vector<8x64xi1> to vector<8x64xi32>
    %37 = arith.sitofp %36 : vector<8x64xi32> to vector<8x64xf32>
    %cst_7 = arith.constant dense<0.000000e+00> : vector<8x32xf32>
    %38 = tpu.matmul %37, %1, %cst_7 {dimension_numbers = #tpu.dot_dimension_numbers<[1], [0], [0], [1], [0, 0, 1, 1], [], []>} : vector<8x64xf32>, vector<64x32xf32>, vector<8x32xf32> -> vector<8x32xf32>
    %39 = vector.extract_strided_slice %0 {offsets = [0, 6], sizes = [8, 1], strides = [1, 1]} : vector<8x8xi32> to vector<8x1xi32>
    %40 = vector.broadcast %39 : vector<8x1xi32> to vector<8x64xi32>
    %41 = arith.cmpi eq, %40, %2 : vector<8x64xi32>
    %42 = arith.extui %41 : vector<8x64xi1> to vector<8x64xi32>
    %43 = arith.sitofp %42 : vector<8x64xi32> to vector<8x64xf32>
    %cst_8 = arith.constant dense<0.000000e+00> : vector<8x32xf32>
    %44 = tpu.matmul %43, %1, %cst_8 {dimension_numbers = #tpu.dot_dimension_numbers<[1], [0], [0], [1], [0, 0, 1, 1], [], []>} : vector<8x64xf32>, vector<64x32xf32>, vector<8x32xf32> -> vector<8x32xf32>
    %45 = vector.extract_strided_slice %0 {offsets = [0, 7], sizes = [8, 1], strides = [1, 1]} : vector<8x8xi32> to vector<8x1xi32>
    %46 = vector.broadcast %45 : vector<8x1xi32> to vector<8x64xi32>
    %47 = arith.cmpi eq, %46, %2 : vector<8x64xi32>
    %48 = arith.extui %47 : vector<8x64xi1> to vector<8x64xi32>
    %49 = arith.sitofp %48 : vector<8x64xi32> to vector<8x64xf32>
    %cst_9 = arith.constant dense<0.000000e+00> : vector<8x32xf32>
    %50 = tpu.matmul %49, %1, %cst_9 {dimension_numbers = #tpu.dot_dimension_numbers<[1], [0], [0], [1], [0, 0, 1, 1], [], []>} : vector<8x64xf32>, vector<64x32xf32>, vector<8x32xf32> -> vector<8x32xf32>
    %c0_10 = arith.constant 0 : index
    %c0_11 = arith.constant 0 : index
    %51 = vector.load %arg4[%c0_10, %c0_11] : memref<1x32xf32, #tpu.memory_space<vmem>>, vector<1x32xf32>
    %52 = vector.shape_cast %51 : vector<1x32xf32> to vector<1x32xf32>
    %53 = vector.broadcast %52 : vector<1x32xf32> to vector<8x32xf32>
    %c1 = arith.constant 1 : index
    %c0_12 = arith.constant 0 : index
    %c0_13 = arith.constant 0 : index
    %54 = vector.load %arg3[%c1, %c0_12, %c0_13] : memref<3x32x32xf32, #tpu.memory_space<vmem>>, vector<1x32x32xf32>
    %55 = vector.shape_cast %54 : vector<1x32x32xf32> to vector<32x32xf32>
    %cst_14 = arith.constant dense<0.000000e+00> : vector<8x32xf32>
    %56 = tpu.matmul %8, %55, %cst_14 {dimension_numbers = #tpu.dot_dimension_numbers<[1], [0], [0], [1], [0, 0, 1, 1], [], []>} : vector<8x32xf32>, vector<32x32xf32>, vector<8x32xf32> -> vector<8x32xf32>
    %57 = arith.addf %53, %56 : vector<8x32xf32>
    %c2 = arith.constant 2 : index
    %c0_15 = arith.constant 0 : index
    %c0_16 = arith.constant 0 : index
    %58 = vector.load %arg3[%c2, %c0_15, %c0_16] : memref<3x32x32xf32, #tpu.memory_space<vmem>>, vector<1x32x32xf32>
    %59 = vector.shape_cast %58 : vector<1x32x32xf32> to vector<32x32xf32>
    %cst_17 = arith.constant dense<0.000000e+00> : vector<8x32xf32>
    %60 = tpu.matmul %14, %59, %cst_17 {dimension_numbers = #tpu.dot_dimension_numbers<[1], [0], [0], [1], [0, 0, 1, 1], [], []>} : vector<8x32xf32>, vector<32x32xf32>, vector<8x32xf32> -> vector<8x32xf32>
    %61 = arith.addf %57, %60 : vector<8x32xf32>
    %c0_18 = arith.constant 0 : index
    %c0_19 = arith.constant 0 : index
    %c0_20 = arith.constant 0 : index
    %62 = vector.load %arg3[%c0_18, %c0_19, %c0_20] : memref<3x32x32xf32, #tpu.memory_space<vmem>>, vector<1x32x32xf32>
    %63 = vector.shape_cast %62 : vector<1x32x32xf32> to vector<32x32xf32>
    %cst_21 = arith.constant dense<0.000000e+00> : vector<8x32xf32>
    %64 = tpu.matmul %8, %63, %cst_21 {dimension_numbers = #tpu.dot_dimension_numbers<[1], [0], [0], [1], [0, 0, 1, 1], [], []>} : vector<8x32xf32>, vector<32x32xf32>, vector<8x32xf32> -> vector<8x32xf32>
    %65 = arith.addf %53, %64 : vector<8x32xf32>
    %c1_22 = arith.constant 1 : index
    %c0_23 = arith.constant 0 : index
    %c0_24 = arith.constant 0 : index
    %66 = vector.load %arg3[%c1_22, %c0_23, %c0_24] : memref<3x32x32xf32, #tpu.memory_space<vmem>>, vector<1x32x32xf32>
    %67 = vector.shape_cast %66 : vector<1x32x32xf32> to vector<32x32xf32>
    %cst_25 = arith.constant dense<0.000000e+00> : vector<8x32xf32>
    %68 = tpu.matmul %14, %67, %cst_25 {dimension_numbers = #tpu.dot_dimension_numbers<[1], [0], [0], [1], [0, 0, 1, 1], [], []>} : vector<8x32xf32>, vector<32x32xf32>, vector<8x32xf32> -> vector<8x32xf32>
    %69 = arith.addf %65, %68 : vector<8x32xf32>
    %c2_26 = arith.constant 2 : index
    %c0_27 = arith.constant 0 : index
    %c0_28 = arith.constant 0 : index
    %70 = vector.load %arg3[%c2_26, %c0_27, %c0_28] : memref<3x32x32xf32, #tpu.memory_space<vmem>>, vector<1x32x32xf32>
    %71 = vector.shape_cast %70 : vector<1x32x32xf32> to vector<32x32xf32>
    %cst_29 = arith.constant dense<0.000000e+00> : vector<8x32xf32>
    %72 = tpu.matmul %20, %71, %cst_29 {dimension_numbers = #tpu.dot_dimension_numbers<[1], [0], [0], [1], [0, 0, 1, 1], [], []>} : vector<8x32xf32>, vector<32x32xf32>, vector<8x32xf32> -> vector<8x32xf32>
    %73 = arith.addf %69, %72 : vector<8x32xf32>
    %74 = arith.maximumf %61, %73 : vector<8x32xf32>
    %c0_30 = arith.constant 0 : index
    %c0_31 = arith.constant 0 : index
    %c0_32 = arith.constant 0 : index
    %75 = vector.load %arg3[%c0_30, %c0_31, %c0_32] : memref<3x32x32xf32, #tpu.memory_space<vmem>>, vector<1x32x32xf32>
    %76 = vector.shape_cast %75 : vector<1x32x32xf32> to vector<32x32xf32>
    %cst_33 = arith.constant dense<0.000000e+00> : vector<8x32xf32>
    %77 = tpu.matmul %14, %76, %cst_33 {dimension_numbers = #tpu.dot_dimension_numbers<[1], [0], [0], [1], [0, 0, 1, 1], [], []>} : vector<8x32xf32>, vector<32x32xf32>, vector<8x32xf32> -> vector<8x32xf32>
    %78 = arith.addf %53, %77 : vector<8x32xf32>
    %c1_34 = arith.constant 1 : index
    %c0_35 = arith.constant 0 : index
    %c0_36 = arith.constant 0 : index
    %79 = vector.load %arg3[%c1_34, %c0_35, %c0_36] : memref<3x32x32xf32, #tpu.memory_space<vmem>>, vector<1x32x32xf32>
    %80 = vector.shape_cast %79 : vector<1x32x32xf32> to vector<32x32xf32>
    %cst_37 = arith.constant dense<0.000000e+00> : vector<8x32xf32>
    %81 = tpu.matmul %20, %80, %cst_37 {dimension_numbers = #tpu.dot_dimension_numbers<[1], [0], [0], [1], [0, 0, 1, 1], [], []>} : vector<8x32xf32>, vector<32x32xf32>, vector<8x32xf32> -> vector<8x32xf32>
    %82 = arith.addf %78, %81 : vector<8x32xf32>
    %c2_38 = arith.constant 2 : index
    %c0_39 = arith.constant 0 : index
    %c0_40 = arith.constant 0 : index
    %83 = vector.load %arg3[%c2_38, %c0_39, %c0_40] : memref<3x32x32xf32, #tpu.memory_space<vmem>>, vector<1x32x32xf32>
    %84 = vector.shape_cast %83 : vector<1x32x32xf32> to vector<32x32xf32>
    %cst_41 = arith.constant dense<0.000000e+00> : vector<8x32xf32>
    %85 = tpu.matmul %26, %84, %cst_41 {dimension_numbers = #tpu.dot_dimension_numbers<[1], [0], [0], [1], [0, 0, 1, 1], [], []>} : vector<8x32xf32>, vector<32x32xf32>, vector<8x32xf32> -> vector<8x32xf32>
    %86 = arith.addf %82, %85 : vector<8x32xf32>
    %87 = arith.maximumf %74, %86 : vector<8x32xf32>
    %c0_42 = arith.constant 0 : index
    %c0_43 = arith.constant 0 : index
    %c0_44 = arith.constant 0 : index
    %88 = vector.load %arg3[%c0_42, %c0_43, %c0_44] : memref<3x32x32xf32, #tpu.memory_space<vmem>>, vector<1x32x32xf32>
    %89 = vector.shape_cast %88 : vector<1x32x32xf32> to vector<32x32xf32>
    %cst_45 = arith.constant dense<0.000000e+00> : vector<8x32xf32>
    %90 = tpu.matmul %20, %89, %cst_45 {dimension_numbers = #tpu.dot_dimension_numbers<[1], [0], [0], [1], [0, 0, 1, 1], [], []>} : vector<8x32xf32>, vector<32x32xf32>, vector<8x32xf32> -> vector<8x32xf32>
    %91 = arith.addf %53, %90 : vector<8x32xf32>
    %c1_46 = arith.constant 1 : index
    %c0_47 = arith.constant 0 : index
    %c0_48 = arith.constant 0 : index
    %92 = vector.load %arg3[%c1_46, %c0_47, %c0_48] : memref<3x32x32xf32, #tpu.memory_space<vmem>>, vector<1x32x32xf32>
    %93 = vector.shape_cast %92 : vector<1x32x32xf32> to vector<32x32xf32>
    %cst_49 = arith.constant dense<0.000000e+00> : vector<8x32xf32>
    %94 = tpu.matmul %26, %93, %cst_49 {dimension_numbers = #tpu.dot_dimension_numbers<[1], [0], [0], [1], [0, 0, 1, 1], [], []>} : vector<8x32xf32>, vector<32x32xf32>, vector<8x32xf32> -> vector<8x32xf32>
    %95 = arith.addf %91, %94 : vector<8x32xf32>
    %c2_50 = arith.constant 2 : index
    %c0_51 = arith.constant 0 : index
    %c0_52 = arith.constant 0 : index
    %96 = vector.load %arg3[%c2_50, %c0_51, %c0_52] : memref<3x32x32xf32, #tpu.memory_space<vmem>>, vector<1x32x32xf32>
    %97 = vector.shape_cast %96 : vector<1x32x32xf32> to vector<32x32xf32>
    %cst_53 = arith.constant dense<0.000000e+00> : vector<8x32xf32>
    %98 = tpu.matmul %32, %97, %cst_53 {dimension_numbers = #tpu.dot_dimension_numbers<[1], [0], [0], [1], [0, 0, 1, 1], [], []>} : vector<8x32xf32>, vector<32x32xf32>, vector<8x32xf32> -> vector<8x32xf32>
    %99 = arith.addf %95, %98 : vector<8x32xf32>
    %100 = arith.maximumf %87, %99 : vector<8x32xf32>
    %c0_54 = arith.constant 0 : index
    %c0_55 = arith.constant 0 : index
    %c0_56 = arith.constant 0 : index
    %101 = vector.load %arg3[%c0_54, %c0_55, %c0_56] : memref<3x32x32xf32, #tpu.memory_space<vmem>>, vector<1x32x32xf32>
    %102 = vector.shape_cast %101 : vector<1x32x32xf32> to vector<32x32xf32>
    %cst_57 = arith.constant dense<0.000000e+00> : vector<8x32xf32>
    %103 = tpu.matmul %26, %102, %cst_57 {dimension_numbers = #tpu.dot_dimension_numbers<[1], [0], [0], [1], [0, 0, 1, 1], [], []>} : vector<8x32xf32>, vector<32x32xf32>, vector<8x32xf32> -> vector<8x32xf32>
    %104 = arith.addf %53, %103 : vector<8x32xf32>
    %c1_58 = arith.constant 1 : index
    %c0_59 = arith.constant 0 : index
    %c0_60 = arith.constant 0 : index
    %105 = vector.load %arg3[%c1_58, %c0_59, %c0_60] : memref<3x32x32xf32, #tpu.memory_space<vmem>>, vector<1x32x32xf32>
    %106 = vector.shape_cast %105 : vector<1x32x32xf32> to vector<32x32xf32>
    %cst_61 = arith.constant dense<0.000000e+00> : vector<8x32xf32>
    %107 = tpu.matmul %32, %106, %cst_61 {dimension_numbers = #tpu.dot_dimension_numbers<[1], [0], [0], [1], [0, 0, 1, 1], [], []>} : vector<8x32xf32>, vector<32x32xf32>, vector<8x32xf32> -> vector<8x32xf32>
    %108 = arith.addf %104, %107 : vector<8x32xf32>
    %c2_62 = arith.constant 2 : index
    %c0_63 = arith.constant 0 : index
    %c0_64 = arith.constant 0 : index
    %109 = vector.load %arg3[%c2_62, %c0_63, %c0_64] : memref<3x32x32xf32, #tpu.memory_space<vmem>>, vector<1x32x32xf32>
    %110 = vector.shape_cast %109 : vector<1x32x32xf32> to vector<32x32xf32>
    %cst_65 = arith.constant dense<0.000000e+00> : vector<8x32xf32>
    %111 = tpu.matmul %38, %110, %cst_65 {dimension_numbers = #tpu.dot_dimension_numbers<[1], [0], [0], [1], [0, 0, 1, 1], [], []>} : vector<8x32xf32>, vector<32x32xf32>, vector<8x32xf32> -> vector<8x32xf32>
    %112 = arith.addf %108, %111 : vector<8x32xf32>
    %113 = arith.maximumf %100, %112 : vector<8x32xf32>
    %c0_66 = arith.constant 0 : index
    %c0_67 = arith.constant 0 : index
    %c0_68 = arith.constant 0 : index
    %114 = vector.load %arg3[%c0_66, %c0_67, %c0_68] : memref<3x32x32xf32, #tpu.memory_space<vmem>>, vector<1x32x32xf32>
    %115 = vector.shape_cast %114 : vector<1x32x32xf32> to vector<32x32xf32>
    %cst_69 = arith.constant dense<0.000000e+00> : vector<8x32xf32>
    %116 = tpu.matmul %32, %115, %cst_69 {dimension_numbers = #tpu.dot_dimension_numbers<[1], [0], [0], [1], [0, 0, 1, 1], [], []>} : vector<8x32xf32>, vector<32x32xf32>, vector<8x32xf32> -> vector<8x32xf32>
    %117 = arith.addf %53, %116 : vector<8x32xf32>
    %c1_70 = arith.constant 1 : index
    %c0_71 = arith.constant 0 : index
    %c0_72 = arith.constant 0 : index
    %118 = vector.load %arg3[%c1_70, %c0_71, %c0_72] : memref<3x32x32xf32, #tpu.memory_space<vmem>>, vector<1x32x32xf32>
    %119 = vector.shape_cast %118 : vector<1x32x32xf32> to vector<32x32xf32>
    %cst_73 = arith.constant dense<0.000000e+00> : vector<8x32xf32>
    %120 = tpu.matmul %38, %119, %cst_73 {dimension_numbers = #tpu.dot_dimension_numbers<[1], [0], [0], [1], [0, 0, 1, 1], [], []>} : vector<8x32xf32>, vector<32x32xf32>, vector<8x32xf32> -> vector<8x32xf32>
    %121 = arith.addf %117, %120 : vector<8x32xf32>
    %c2_74 = arith.constant 2 : index
    %c0_75 = arith.constant 0 : index
    %c0_76 = arith.constant 0 : index
    %122 = vector.load %arg3[%c2_74, %c0_75, %c0_76] : memref<3x32x32xf32, #tpu.memory_space<vmem>>, vector<1x32x32xf32>
    %123 = vector.shape_cast %122 : vector<1x32x32xf32> to vector<32x32xf32>
    %cst_77 = arith.constant dense<0.000000e+00> : vector<8x32xf32>
    %124 = tpu.matmul %44, %123, %cst_77 {dimension_numbers = #tpu.dot_dimension_numbers<[1], [0], [0], [1], [0, 0, 1, 1], [], []>} : vector<8x32xf32>, vector<32x32xf32>, vector<8x32xf32> -> vector<8x32xf32>
    %125 = arith.addf %121, %124 : vector<8x32xf32>
    %126 = arith.maximumf %113, %125 : vector<8x32xf32>
    %c0_78 = arith.constant 0 : index
    %c0_79 = arith.constant 0 : index
    %c0_80 = arith.constant 0 : index
    %127 = vector.load %arg3[%c0_78, %c0_79, %c0_80] : memref<3x32x32xf32, #tpu.memory_space<vmem>>, vector<1x32x32xf32>
    %128 = vector.shape_cast %127 : vector<1x32x32xf32> to vector<32x32xf32>
    %cst_81 = arith.constant dense<0.000000e+00> : vector<8x32xf32>
    %129 = tpu.matmul %38, %128, %cst_81 {dimension_numbers = #tpu.dot_dimension_numbers<[1], [0], [0], [1], [0, 0, 1, 1], [], []>} : vector<8x32xf32>, vector<32x32xf32>, vector<8x32xf32> -> vector<8x32xf32>
    %130 = arith.addf %53, %129 : vector<8x32xf32>
    %c1_82 = arith.constant 1 : index
    %c0_83 = arith.constant 0 : index
    %c0_84 = arith.constant 0 : index
    %131 = vector.load %arg3[%c1_82, %c0_83, %c0_84] : memref<3x32x32xf32, #tpu.memory_space<vmem>>, vector<1x32x32xf32>
    %132 = vector.shape_cast %131 : vector<1x32x32xf32> to vector<32x32xf32>
    %cst_85 = arith.constant dense<0.000000e+00> : vector<8x32xf32>
    %133 = tpu.matmul %44, %132, %cst_85 {dimension_numbers = #tpu.dot_dimension_numbers<[1], [0], [0], [1], [0, 0, 1, 1], [], []>} : vector<8x32xf32>, vector<32x32xf32>, vector<8x32xf32> -> vector<8x32xf32>
    %134 = arith.addf %130, %133 : vector<8x32xf32>
    %c2_86 = arith.constant 2 : index
    %c0_87 = arith.constant 0 : index
    %c0_88 = arith.constant 0 : index
    %135 = vector.load %arg3[%c2_86, %c0_87, %c0_88] : memref<3x32x32xf32, #tpu.memory_space<vmem>>, vector<1x32x32xf32>
    %136 = vector.shape_cast %135 : vector<1x32x32xf32> to vector<32x32xf32>
    %cst_89 = arith.constant dense<0.000000e+00> : vector<8x32xf32>
    %137 = tpu.matmul %50, %136, %cst_89 {dimension_numbers = #tpu.dot_dimension_numbers<[1], [0], [0], [1], [0, 0, 1, 1], [], []>} : vector<8x32xf32>, vector<32x32xf32>, vector<8x32xf32> -> vector<8x32xf32>
    %138 = arith.addf %134, %137 : vector<8x32xf32>
    %139 = arith.maximumf %126, %138 : vector<8x32xf32>
    %c0_90 = arith.constant 0 : index
    %c0_91 = arith.constant 0 : index
    %c0_92 = arith.constant 0 : index
    %140 = vector.load %arg3[%c0_90, %c0_91, %c0_92] : memref<3x32x32xf32, #tpu.memory_space<vmem>>, vector<1x32x32xf32>
    %141 = vector.shape_cast %140 : vector<1x32x32xf32> to vector<32x32xf32>
    %cst_93 = arith.constant dense<0.000000e+00> : vector<8x32xf32>
    %142 = tpu.matmul %44, %141, %cst_93 {dimension_numbers = #tpu.dot_dimension_numbers<[1], [0], [0], [1], [0, 0, 1, 1], [], []>} : vector<8x32xf32>, vector<32x32xf32>, vector<8x32xf32> -> vector<8x32xf32>
    %143 = arith.addf %53, %142 : vector<8x32xf32>
    %c1_94 = arith.constant 1 : index
    %c0_95 = arith.constant 0 : index
    %c0_96 = arith.constant 0 : index
    %144 = vector.load %arg3[%c1_94, %c0_95, %c0_96] : memref<3x32x32xf32, #tpu.memory_space<vmem>>, vector<1x32x32xf32>
    %145 = vector.shape_cast %144 : vector<1x32x32xf32> to vector<32x32xf32>
    %cst_97 = arith.constant dense<0.000000e+00> : vector<8x32xf32>
    %146 = tpu.matmul %50, %145, %cst_97 {dimension_numbers = #tpu.dot_dimension_numbers<[1], [0], [0], [1], [0, 0, 1, 1], [], []>} : vector<8x32xf32>, vector<32x32xf32>, vector<8x32xf32> -> vector<8x32xf32>
    %147 = arith.addf %143, %146 : vector<8x32xf32>
    %148 = arith.maximumf %139, %147 : vector<8x32xf32>
    %c0_98 = arith.constant 0 : index
    %c0_99 = arith.constant 0 : index
    %149 = vector.load %arg5[%c0_98, %c0_99] : memref<8x32xf32, #tpu.memory_space<vmem>>, vector<8x32xf32>
    tpu.vector_store %arg5[%c0_98, %c0_99], %148 {strides = array<i32>} : memref<8x32xf32, #tpu.memory_space<vmem>>, vector<8x32xf32>,
    return
  }
  func.func @transform_0(%arg0: i32) -> (i32, i32) {
    %c0_i32 = arith.constant 0 : i32
    %c0_i32_0 = arith.constant 0 : i32
    return %arg0, %c0_i32 : i32, i32
  }
  func.func @transform_1(%arg0: i32) -> (i32, i32) {
    %c0_i32 = arith.constant 0 : i32
    %c0_i32_0 = arith.constant 0 : i32
    %c0_i32_1 = arith.constant 0 : i32
    return %c0_i32, %c0_i32_0 : i32, i32
  }
  func.func @transform_2(%arg0: i32) -> (i32, i32, i32) {
    %c0_i32 = arith.constant 0 : i32
    %c0_i32_0 = arith.constant 0 : i32
    %c0_i32_1 = arith.constant 0 : i32
    %c0_i32_2 = arith.constant 0 : i32
    return %c0_i32, %c0_i32_0, %c0_i32_1 : i32, i32, i32
  }
  func.func @transform_3(%arg0: i32) -> (i32, i32) {
    %c0_i32 = arith.constant 0 : i32
    %c0_i32_0 = arith.constant 0 : i32
    %c0_i32_1 = arith.constant 0 : i32
    return %c0_i32, %c0_i32_0 : i32, i32
  }
  func.func @transform_4(%arg0: i32) -> (i32, i32) {
    %c0_i32 = arith.constant 0 : i32
    %c0_i32_0 = arith.constant 0 : i32
    return %arg0, %c0_i32 : i32, i32
  }
}

</mosaic_0001>

<bundles_post_ra>
// kernel: char_encoder_forward.1
= control target key start
LH: loop header
LB: loop body
LE: loop exit
PB: predicated region body
PF: predicated region fallthrough
CT: control target
= control target key end

     0   :  { %s3474_s15 = smov 0   ;;  %s3842_s0 = inlined_call_operand.vmem [shape: s32[16,8], index: 0, kind: input, shape index: {}]   ;;  %s3843_s1 = inlined_call_operand.vmem [shape: f32[64,32], index: 1, kind: input, shape index: {}]   ;;  %s3844_s2 = inlined_call_operand.vmem [shape: f32[3,32,32], index: 2, kind: input, shape index: {}]   ;;  %s3845_s3 = inlined_call_operand.vmem [shape: f32[1,32], index: 3, kind: input, shape index: {}]   ;;  %s3846_s4 = inlined_call_operand.vmem [shape: f32[16,32], index: 4, kind: output, shape index: {}]  }
   0x1 LB: > { %s2506_s16 = sadd.s32 4294967295, %s3436_s15   ;;  %p2510_p0 = scmp.ge.s32.totalorder %s3436_s15, 1  ;;  %s3436_s15 = sphi %s3474_s15, %s14_s15  }
   0x2   : > { %p161_p1 = scmp.lt.s32.totalorder %s3436_s15, 3 }
   0x4   : > { %p162_p2 = pnand %p2510_p0, %p161_p1 }
   0x5   : > { %p185_p3 = scmp.lt.s32.totalorder (!%p162_p2), %s2506_s16, 1  ;;  %v194_v0 = vld [vmem:[%s3843_s1] sm:$0xff] (!%p162_p2)  ;;  %v3438_v1 = vmov (!%p162_p2), 0   ;;  %v3439_v2 = vmov (!%p162_p2), 2   ;;  %v195_v3 = vld [vmem:[%s3843_s1 + $0x8] sm:$0xff] (!%p162_p2)  ;;  %v196_v4 = vld [vmem:[%s3843_s1 + $0x10] sm:$0xff] (!%p162_p2)  ;;  %v202_v23 = vlaneseq (!%p162_p2) }
   0x6   : > { %165 = sbr.rel (%p162_p2) target bundleno = 658 (0x292), region = 36  ;;  %3421 = vset.pattern.permute.xlu0 (!%p162_p2), %v3438_v1  ;;  %3423 = vset.pattern.permute.xlu1 (!%p162_p2), %v3439_v2  ;;  %v3493_v5 = vpack.c.bf16 (!%p162_p2), %v195_v3, %v194_v0  ;;  %v197_v6 = vld [vmem:[%s3843_s1 + $0x18] sm:$0xff] (!%p162_p2)  ;;  %v3440_v7 = vmov (!%p162_p2), 0.0|0.0   ;;  %v198_v10 = vld [vmem:[%s3843_s1 + $0x20] sm:$0xff] (!%p162_p2)  ;;  %v199_v11 = vld [vmem:[%s3843_s1 + $0x28] sm:$0xff] (!%p162_p2)  ;;  %vm3441_vm0 = vmmov (!%p162_p2), 0  }
   0x7   : > { %3138 = vmatprep.subr.bf16.mxu0 (!%p162_p2), %v3440_v7  ;;  %3150 = vmatprep.subr.bf16.mxu1 (!%p162_p2), %v3440_v7  ;;  %v3502_v8 = vpack.c.bf16 (!%p162_p2), %v197_v6, %v196_v4  ;;  %v3521_v12 = vpack.c.bf16 (!%p162_p2), %v199_v11, %v198_v10  ;;  %v3442_v13 = vmov (!%p162_p2), 0.0   ;;  %v3443_v14 = vmov (!%p162_p2), 1   ;;  %v200_v16 = vld [vmem:[%s3843_s1 + $0x30] sm:$0xff] (!%p162_p2)  ;;  %v201_v17 = vld [vmem:[%s3843_s1 + $0x38] sm:$0xff] (!%p162_p2)  ;;  %v2530_v38 = vld [vmem:[%s3844_s2 + $0x20] sm:$0xff] (!%p162_p2) }
   0x8   : > { %3140 = vmatpush3.bf16.msra.mxu0 (!%p162_p2), %v3493_v5  ;;  %3152 = vmatpush3.bf16.msra.mxu1 (!%p162_p2), %v3493_v5  ;;  %v3444_v15 = vmov (!%p162_p2), 3   ;;  %v3537_v18 = vpack.c.bf16 (!%p162_p2), %v201_v17, %v200_v16  ;;  %v3445_v19 = vmov (!%p162_p2), 4   ;;  %v3446_v20 = vmov (!%p162_p2), 5   ;;  %v2531_v39 = vld [vmem:[%s3844_s2 + $0x28] sm:$0xff] (!%p162_p2)  ;;  %v2532_v43 = vld [vmem:[%s3844_s2 + $0x30] sm:$0xff] (!%p162_p2)  ;;  %v2533_v44 = vld [vmem:[%s3844_s2 + $0x38] sm:$0xff] (!%p162_p2) }
   0x9   : > { %3141 = vmatprep.subr.bf16.mxu0 (!%p162_p2), %v3440_v7  ;;  %3153 = vmatprep.subr.bf16.mxu1 (!%p162_p2), %v3440_v7  ;;  %v3447_v21 = vmov (!%p162_p2), 6   ;;  %v3448_v22 = vmov (!%p162_p2), 7   ;;  %v3544_v24 = vand.u32 (!%p162_p2), 127, %v202_v23  ;;  %vm210_vm1 = vcmask (!%p162_p2), 523264   ;;  %v1003_v45 = vld [vmem:[%s3844_s2] sm:$0xff] (!%p162_p2)  ;;  %v1004_v46 = vld [vmem:[%s3844_s2 + $0x8] sm:$0xff] (!%p162_p2) }
   0xa   : > { %2760 = vmatprep.mubr.msk.f32.mxu0 (!%p162_p2), %vm3441_vm0, %v3442_v13  ;;  %2779 = vmatprep.mubr.msk.f32.mxu1 (!%p162_p2), %vm3441_vm0, %v3442_v13  ;;  %v3627_v42 = vpack.c.bf16 (!%p162_p2), %v2531_v39, %v2530_v38  ;;  %v3647_v47 = vpack.c.bf16 (!%p162_p2), %v2533_v44, %v2532_v43  ;;  %v3653_v49 = vpack.c.bf16 (!%p162_p2), %v1004_v46, %v1003_v45  ;;  %v1005_v50 = vld [vmem:[%s3844_s2 + $0x10] sm:$0xff] (!%p162_p2)  ;;  %v1006_v51 = vld [vmem:[%s3844_s2 + $0x18] sm:$0xff] (!%p162_p2)  ;;  %v2535_v53 = vld [vmem:[%s3844_s2 + $0x40] sm:$0xff] (!%p162_p2)  ;;  %vm849_vm10 = vcmask (!%p162_p2), 261120  }
   0xb   : > { %v3666_v52 = vpack.c.bf16 (!%p162_p2), %v1006_v51, %v1005_v50  ;;  %v2536_v54 = vld [vmem:[%s3844_s2 + $0x48] sm:$0xff] (!%p162_p2)  ;;  %v2537_v56 = vld [vmem:[%s3844_s2 + $0x50] sm:$0xff] (!%p162_p2)  ;;  %v2538_v57 = vld [vmem:[%s3844_s2 + $0x58] sm:$0xff] (!%p162_p2) }
   0xc   : > { %3143 = vmatpush3.bf16.msra.mxu0 (!%p162_p2), %v3502_v8  ;;  %3155 = vmatpush3.bf16.msra.mxu1 (!%p162_p2), %v3502_v8  ;;  %v3680_v55 = vpack.c.bf16 (!%p162_p2), %v2536_v54, %v2535_v53  ;;  %v3692_v60 = vpack.c.bf16 (!%p162_p2), %v2538_v57, %v2537_v56 }
   0xd   : > { %s3848_s16 = smov (!%p185_p3, %s2506_s16), 1  ;;  %3144 = vmatprep.subr.bf16.mxu0 %v3440_v7  ;;  %3156 = vmatprep.subr.bf16.mxu1 %v3440_v7 }
   0xe   : > { %s2511_s25 = sshll.u32 %s3848_s16, 3 }
   0xf   : > { %s188_s28 = scalar_lea.vmem %s3842_s0, %s2511_s25  ;;  %s192_s18 = scalar_lea.vmem %s3846_s4, %s2511_s25 }
  0x10   : > { %v193_v9 = vld [vmem:[%s188_s28] sm:$0xff]  ;;  %3146 = vmatpush3.bf16.msra.mxu0 %v3521_v12  ;;  %3158 = vmatpush3.bf16.msra.mxu1 %v3521_v12 }
  0x11   : > { %205 = vperm.xlu0 %3421, %v193_v9   ;;  %364 = vperm.xlu1 %3423, %v193_v9  }
  0x12   : > { %3147 = vmatprep.subr.bf16.mxu0 %v3440_v7  ;;  %3159 = vmatprep.subr.bf16.mxu1 %v3440_v7 }
  0x14   : > { %3149 = vmatpush3.bf16.msra.mxu0 %v3537_v18  ;;  %3161 = vmatpush3.bf16.msra.mxu1 %v3537_v18 }
  0x15   : > { %3422 = vset.pattern.permute.xlu0 %v3443_v14  ;;  %3424 = vset.pattern.permute.xlu1 %v3444_v15 }
  0x16   : > { %285 = vperm.xlu0 %3422, %v193_v9   ;;  %443 = vperm.xlu1 %3424, %v193_v9  }
  0x17   : > { %3162 = vmatprep.subr.bf16.mxu0 %v3440_v7  ;;  %3174 = vmatprep.subr.bf16.mxu1 %v3440_v7 }
  0x1a   : > { %3425 = vset.pattern.permute.xlu1 %v3445_v19  ;;  %3426 = vset.pattern.permute.xlu0 %v3446_v20 }
  0x1b   : > { %522 = vperm.xlu1 %3425, %v193_v9   ;;  %601 = vperm.xlu0 %3426, %v193_v9  }
  0x1f   : > { %3427 = vset.pattern.permute.xlu1 %v3447_v21  ;;  %3429 = vset.pattern.permute.xlu0 %v3448_v22 }
  0x20   : > { %680 = vperm.xlu1 %3427, %v193_v9  }
  0x24   : > { %3428 = vset.pattern.permute.xlu1 %v3448_v22 }
  0x25   : > { %759 = vperm.xlu1 %3428, %v193_v9  }
  0x90   : > { %v206_v25 = vpop.permute.xlu0 %205  ;;  %v365_v29 = vpop.permute.xlu1 %364 }
  0x91   : > { %vm207_vm2 = vcmp.eq.s32.totalorder %v206_v25, %v3544_v24  ;;  %vm366_vm4 = vcmp.eq.s32.totalorder %v365_v29, %v3544_v24 }
  0x92   : > { %v2513_v26 = vsel %vm207_vm2, 1.0, %v3442_v13  ;;  %v2517_v31 = vsel %vm366_vm4, 1.0, %v3442_v13 }
  0x93   : > { %2761 = vmatmul.mubr.msk.f32.vlgmr.msra.gmra.mrb[0].mxu0 %vm210_vm1, %v2513_v26 }
  0x94   : > { %3164 = vmatpush3.bf16.msra.mxu0 %v3493_v5  ;;  %2798 = vmatprep.mubr.msk.f32.mxu0 %vm3441_vm0, %v3442_v13 }
  0x95   : > { %3165 = vmatprep.subr.bf16.mxu0 %v3440_v7  ;;  %v286_v27 = vpop.permute.xlu0 %285  ;;  %v444_v30 = vpop.permute.xlu1 %443 }
  0x96   : > { %vm287_vm3 = vcmp.eq.s32.totalorder %v286_v27, %v3544_v24  ;;  %vm445_vm5 = vcmp.eq.s32.totalorder %v444_v30, %v3544_v24 }
  0x97   : > { %v2515_v28 = vsel %vm287_vm3, 1.0, %v3442_v13  ;;  %v2519_v32 = vsel %vm445_vm5, 1.0, %v3442_v13 }
  0x98   : > { %3167 = vmatpush3.bf16.msra.mxu0 %v3502_v8  ;;  %2780 = vmatmul.mubr.msk.f32.vlgmr.msra.gmra.mrb[0].mxu1 %vm210_vm1, %v2515_v28 }
  0x99   : > { %3168 = vmatprep.subr.bf16.mxu0 %v3440_v7  ;;  %3176 = vmatpush3.bf16.msra.mxu1 %v3493_v5 }
  0x9a   : > { %3177 = vmatprep.subr.bf16.mxu1 %v3440_v7  ;;  %2817 = vmatprep.mubr.msk.f32.mxu1 %vm3441_vm0, %v3442_v13  ;;  %v523_v33 = vpop.permute.xlu1 %522  ;;  %v602_v34 = vpop.permute.xlu0 %601 }
  0x9b   : > { %vm524_vm6 = vcmp.eq.s32.totalorder %v523_v33, %v3544_v24  ;;  %vm603_vm7 = vcmp.eq.s32.totalorder %v602_v34, %v3544_v24 }
  0x9c   : > { %3170 = vmatpush3.bf16.msra.mxu0 %v3521_v12  ;;  %v2521_v35 = vsel %vm524_vm6, 1.0, %v3442_v13  ;;  %v2523_v36 = vsel %vm603_vm7, 1.0, %v3442_v13 }
  0x9d   : > { %3171 = vmatprep.subr.bf16.mxu0 %v3440_v7  ;;  %3179 = vmatpush3.bf16.msra.mxu1 %v3502_v8 }
  0x9e   : > { %3180 = vmatprep.subr.bf16.mxu1 %v3440_v7 }
  0x9f   : > { %v681_v37 = vpop.permute.xlu1 %680 }
  0xa0   : > { %3173 = vmatpush3.bf16.msra.mxu0 %v3537_v18  ;;  %vm682_vm8 = vcmp.eq.s32.totalorder %v681_v37, %v3544_v24 }
  0xa1   : > { %3186 = vmatprep.subr.bf16.mxu0 %v3440_v7  ;;  %3182 = vmatpush3.bf16.msra.mxu1 %v3521_v12  ;;  %v2525_v41 = vsel %vm682_vm8, 1.0, %v3442_v13 }
  0xa2   : > { %3183 = vmatprep.subr.bf16.mxu1 %v3440_v7 }
  0xa3   : > { %2799 = vmatmul.mubr.msk.f32.vlgmr.msra.gmra.mrb[2].mxu0 %vm210_vm1, %v2517_v31 }
  0xa4   : > { %3188 = vmatpush3.bf16.msra.mxu0 %v3493_v5  ;;  %2836 = vmatprep.mubr.msk.f32.mxu0 %vm3441_vm0, %v3442_v13  ;;  %v760_v40 = vpop.permute.xlu1 %759 }
  0xa5   : > { %3189 = vmatprep.subr.bf16.mxu0 %v3440_v7  ;;  %3185 = vmatpush3.bf16.msra.mxu1 %v3537_v18  ;;  %vm761_vm9 = vcmp.eq.s32.totalorder %v760_v40, %v3544_v24 }
  0xa6   : > { %3198 = vmatprep.subr.bf16.mxu1 %v3440_v7  ;;  %v2527_v48 = vsel %vm761_vm9, 1.0, %v3442_v13 }
  0xa8   : > { %3191 = vmatpush3.bf16.msra.mxu0 %v3502_v8  ;;  %2818 = vmatmul.mubr.msk.f32.vlgmr.msra.gmra.mrb[2].mxu1 %vm210_vm1, %v2519_v32 }
  0xa9   : > { %3192 = vmatprep.subr.bf16.mxu0 %v3440_v7  ;;  %3200 = vmatpush3.bf16.msra.mxu1 %v3493_v5 }
  0xaa   : > { %3201 = vmatprep.subr.bf16.mxu1 %v3440_v7  ;;  %2855 = vmatprep.mubr.msk.f32.mxu1 %vm3441_vm0, %v3442_v13 }
  0xac   : > { %3194 = vmatpush3.bf16.msra.mxu0 %v3521_v12 }
  0xad   : > { %3195 = vmatprep.subr.bf16.mxu0 %v3440_v7  ;;  %3203 = vmatpush3.bf16.msra.mxu1 %v3502_v8 }
  0xae   : > { %3204 = vmatprep.subr.bf16.mxu1 %v3440_v7 }
  0xb0   : > { %3197 = vmatpush3.bf16.msra.mxu0 %v3537_v18 }
  0xb1   : > { %3210 = vmatprep.subr.bf16.mxu0 %v3440_v7  ;;  %3206 = vmatpush3.bf16.msra.mxu1 %v3521_v12 }
  0xb2   : > { %3207 = vmatprep.subr.bf16.mxu1 %v3440_v7 }
  0xb3   : > { %2837 = vmatmul.mubr.msk.f32.vlgmr.msra.gmra.mrb[4].mxu0 %vm210_vm1, %v2521_v35 }
  0xb4   : > { %3212 = vmatpush3.bf16.msra.mxu0 %v3493_v5  ;;  %2874 = vmatprep.mubr.msk.f32.mxu0 %vm3441_vm0, %v3442_v13 }
  0xb5   : > { %3213 = vmatprep.subr.bf16.mxu0 %v3440_v7  ;;  %3209 = vmatpush3.bf16.msra.mxu1 %v3537_v18 }
  0xb6   : > { %3222 = vmatprep.subr.bf16.mxu1 %v3440_v7 }
  0xb8   : > { %3215 = vmatpush3.bf16.msra.mxu0 %v3502_v8  ;;  %2856 = vmatmul.mubr.msk.f32.vlgmr.msra.gmra.mrb[4].mxu1 %vm210_vm1, %v2523_v36 }
  0xb9   : > { %3216 = vmatprep.subr.bf16.mxu0 %v3440_v7  ;;  %3224 = vmatpush3.bf16.msra.mxu1 %v3493_v5 }
  0xba   : > { %3225 = vmatprep.subr.bf16.mxu1 %v3440_v7  ;;  %2893 = vmatprep.mubr.msk.f32.mxu1 %vm3441_vm0, %v3442_v13 }
  0xbc   : > { %3218 = vmatpush3.bf16.msra.mxu0 %v3521_v12 }
  0xbd   : > { %3219 = vmatprep.subr.bf16.mxu0 %v3440_v7  ;;  %3227 = vmatpush3.bf16.msra.mxu1 %v3502_v8 }
  0xbe   : > { %3228 = vmatprep.subr.bf16.mxu1 %v3440_v7 }
  0xc0   : > { %3221 = vmatpush3.bf16.msra.mxu0 %v3537_v18 }
  0xc1   : > { %3230 = vmatpush3.bf16.msra.mxu1 %v3521_v12  ;;  %3234 = vmatprep.subr.bf16.mxu0 %v3440_v7 }
  0xc2   : > { %3231 = vmatprep.subr.bf16.mxu1 %v3440_v7 }
  0xc3   : > { %2875 = vmatmul.mubr.msk.f32.vlgmr.msra.gmra.mrb[6].mxu0 %vm210_vm1, %v2525_v41 }
  0xc4   : > { %3236 = vmatpush3.bf16.msra.mxu0 %v3627_v42  ;;  %2904 = vmatprep.mubr.msk.f32.mxu0 %vm3441_vm0, %v3442_v13 }
  0xc5   : > { %3233 = vmatpush3.bf16.msra.mxu1 %v3537_v18  ;;  %3237 = vmatprep.subr.bf16.mxu0 %v3440_v7 }
  0xc6   : > { %3246 = vmatprep.subr.bf16.mxu1 %v3440_v7 }
  0xc8   : > { %2894 = vmatmul.mubr.msk.f32.vlgmr.msra.gmra.mrb[6].mxu1 %vm210_vm1, %v2527_v48  ;;  %3239 = vmatpush3.bf16.msra.mxu0 %v3647_v47 }
  0xc9   : > { %3248 = vmatpush3.bf16.msra.mxu1 %v3653_v49  ;;  %3240 = vmatprep.subr.bf16.mxu0 %v3440_v7 }
  0xca   : > { %3249 = vmatprep.subr.bf16.mxu1 %v3440_v7  ;;  %2926 = vmatprep.mubr.msk.f32.mxu1 %vm3441_vm0, %v3442_v13 }
  0xcd   : > { %3251 = vmatpush3.bf16.msra.mxu1 %v3666_v52 }
  0xce   : > { %3252 = vmatprep.subr.bf16.mxu1 %v3440_v7 }
 0x166   : > { %v280_v58 = vpop.f32.mrb[0].mxu0 }
 0x167   : > { %v2762_v59 = vpop.f32.mrb[1].mxu0  ;;  %2905 = vmatmul.mubr.msk.f32.vlgmr.msra.gmra.mrb[8].mxu0 %vm849_vm10, %v280_v58  ;;  %2927 = vmatmul.mubr.msk.f32.vlgmr.msra.gmra.mrb[8].mxu1 %vm849_vm10, %v280_v58 }
 0x168   : > { %3242 = vmatpush3.bf16.msra.mxu0 %v3680_v55  ;;  %3254 = vmatpush3.bf16.msra.mxu1 %v3627_v42 }
 0x169   : > { %3243 = vmatprep.subr.bf16.mxu0 %v3440_v7  ;;  %3255 = vmatprep.subr.bf16.mxu1 %v3440_v7 }
 0x16a   : > { %2915 = vmatprep.mubr.msk.f32.mxu0 %vm3441_vm0, %v3442_v13  ;;  %2937 = vmatprep.mubr.msk.f32.mxu1 %vm3441_vm0, %v3442_v13 }
 0x16b   : > { %v359_v61 = vpop.f32.mrb[0].mxu1 }
 0x16c   : > { %3245 = vmatpush3.bf16.msra.mxu0 %v3692_v60  ;;  %3257 = vmatpush3.bf16.msra.mxu1 %v3647_v47  ;;  %v2781_v62 = vpop.f32.mrb[1].mxu1 }
 0x16d   : > { %3258 = vmatprep.subr.bf16.mxu1 %v3440_v7  ;;  %3264 = vmatprep.subr.bf16.mxu0 %v3440_v7 }
 0x16f   : > { %2916 = vmatmul.mubr.msk.f32.vlgmr.msra.gmra.mrb[8].mxu0 %vm849_vm10, %v359_v61  ;;  %2938 = vmatmul.mubr.msk.f32.vlgmr.msra.gmra.mrb[8].mxu1 %vm849_vm10, %v359_v61 }
 0x170   : > { %3260 = vmatpush3.bf16.msra.mxu1 %v3680_v55  ;;  %3266 = vmatpush3.bf16.msra.mxu0 %v3653_v49 }
 0x171   : > { %3261 = vmatprep.subr.bf16.mxu1 %v3440_v7  ;;  %3267 = vmatprep.subr.bf16.mxu0 %v3440_v7 }
 0x172   : > { %2959 = vmatprep.mubr.msk.f32.mxu0 %vm3441_vm0, %v3442_v13  ;;  %2948 = vmatprep.mubr.msk.f32.mxu1 %vm3441_vm0, %v3442_v13 }
 0x174   : > { %3263 = vmatpush3.bf16.msra.mxu1 %v3692_v60  ;;  %3269 = vmatpush3.bf16.msra.mxu0 %v3666_v52 }
 0x175   : > { %3270 = vmatprep.subr.bf16.mxu0 %v3440_v7  ;;  %3282 = vmatprep.subr.bf16.mxu1 %v3440_v7 }
 0x176   : > { %v438_v63 = vpop.f32.mrb[2].mxu0 }
 0x177   : > { %2960 = vmatmul.mubr.msk.f32.vlgmr.msra.gmra.mrb[10].mxu0 %vm849_vm10, %v359_v61  ;;  %2949 = vmatmul.mubr.msk.f32.vlgmr.msra.gmra.mrb[8].mxu1 %vm849_vm10, %v438_v63  ;;  %v2800_v0 = vpop.f32.mrb[3].mxu0 }
 0x178   : > { %3272 = vmatpush3.bf16.msra.mxu0 %v3627_v42  ;;  %3284 = vmatpush3.bf16.msra.mxu1 %v3653_v49 }
 0x179   : > { %3273 = vmatprep.subr.bf16.mxu0 %v3440_v7  ;;  %3285 = vmatprep.subr.bf16.mxu1 %v3440_v7 }
 0x17a   : > { %2970 = vmatprep.mubr.msk.f32.mxu0 %vm3441_vm0, %v3442_v13  ;;  %2992 = vmatprep.mubr.msk.f32.mxu1 %vm3441_vm0, %v3442_v13 }
 0x17b   : > { %v517_v1 = vpop.f32.mrb[2].mxu1 }
 0x17c   : > { %3275 = vmatpush3.bf16.msra.mxu0 %v3647_v47  ;;  %3287 = vmatpush3.bf16.msra.mxu1 %v3666_v52  ;;  %v2819_v2 = vpop.f32.mrb[3].mxu1 }
 0x17d   : > { %3276 = vmatprep.subr.bf16.mxu0 %v3440_v7  ;;  %3288 = vmatprep.subr.bf16.mxu1 %v3440_v7 }
 0x17f   : > { %2971 = vmatmul.mubr.msk.f32.vlgmr.msra.gmra.mrb[10].mxu0 %vm849_vm10, %v438_v63  ;;  %2993 = vmatmul.mubr.msk.f32.vlgmr.msra.gmra.mrb[10].mxu1 %vm849_vm10, %v438_v63 }
 0x180   : > { %3278 = vmatpush3.bf16.msra.mxu0 %v3680_v55  ;;  %3290 = vmatpush3.bf16.msra.mxu1 %v3627_v42 }
 0x181   : > { %3279 = vmatprep.subr.bf16.mxu0 %v3440_v7  ;;  %3291 = vmatprep.subr.bf16.mxu1 %v3440_v7 }
 0x182   : > { %2981 = vmatprep.mubr.msk.f32.mxu0 %vm3441_vm0, %v3442_v13  ;;  %3003 = vmatprep.mubr.msk.f32.mxu1 %vm3441_vm0, %v3442_v13 }
 0x184   : > { %3281 = vmatpush3.bf16.msra.mxu0 %v3692_v60  ;;  %3293 = vmatpush3.bf16.msra.mxu1 %v3647_v47 }
 0x185   : > { %3294 = vmatprep.subr.bf16.mxu1 %v3440_v7  ;;  %3300 = vmatprep.subr.bf16.mxu0 %v3440_v7 }
 0x186   : > { %v596_v3 = vpop.f32.mrb[4].mxu0 }
 0x187   : > { %2982 = vmatmul.mubr.msk.f32.vlgmr.msra.gmra.mrb[10].mxu0 %vm849_vm10, %v517_v1  ;;  %3004 = vmatmul.mubr.msk.f32.vlgmr.msra.gmra.mrb[10].mxu1 %vm849_vm10, %v517_v1  ;;  %v2838_v4 = vpop.f32.mrb[5].mxu0 }
 0x188   : > { %3296 = vmatpush3.bf16.msra.mxu1 %v3680_v55  ;;  %3302 = vmatpush3.bf16.msra.mxu0 %v3653_v49 }
 0x189   : > { %3297 = vmatprep.subr.bf16.mxu1 %v3440_v7  ;;  %3303 = vmatprep.subr.bf16.mxu0 %v3440_v7 }
 0x18a   : > { %3014 = vmatprep.mubr.msk.f32.mxu1 %vm3441_vm0, %v3442_v13  ;;  %3025 = vmatprep.mubr.msk.f32.mxu0 %vm3441_vm0, %v3442_v13 }
 0x18b   : > { %v675_v5 = vpop.f32.mrb[4].mxu1 }
 0x18c   : > { %3299 = vmatpush3.bf16.msra.mxu1 %v3692_v60  ;;  %3305 = vmatpush3.bf16.msra.mxu0 %v3666_v52  ;;  %v2857_v6 = vpop.f32.mrb[5].mxu1 }
 0x18d   : > { %3306 = vmatprep.subr.bf16.mxu0 %v3440_v7  ;;  %3318 = vmatprep.subr.bf16.mxu1 %v3440_v7 }
 0x18f   : > { %3015 = vmatmul.mubr.msk.f32.vlgmr.msra.gmra.mrb[10].mxu1 %vm849_vm10, %v596_v3  ;;  %3026 = vmatmul.mubr.msk.f32.vlgmr.msra.gmra.mrb[12].mxu0 %vm849_vm10, %v517_v1 }
 0x190   : > { %3308 = vmatpush3.bf16.msra.mxu0 %v3627_v42  ;;  %3320 = vmatpush3.bf16.msra.mxu1 %v3653_v49 }
 0x191   : > { %3309 = vmatprep.subr.bf16.mxu0 %v3440_v7  ;;  %3321 = vmatprep.subr.bf16.mxu1 %v3440_v7 }
 0x192   : > { %3036 = vmatprep.mubr.msk.f32.mxu0 %vm3441_vm0, %v3442_v13  ;;  %3058 = vmatprep.mubr.msk.f32.mxu1 %vm3441_vm0, %v3442_v13 }
 0x194   : > { %3311 = vmatpush3.bf16.msra.mxu0 %v3647_v47  ;;  %3323 = vmatpush3.bf16.msra.mxu1 %v3666_v52 }
 0x195   : > { %3312 = vmatprep.subr.bf16.mxu0 %v3440_v7  ;;  %3324 = vmatprep.subr.bf16.mxu1 %v3440_v7 }
 0x196   : > { %v754_v8 = vpop.f32.mrb[6].mxu0 }
 0x197   : > { %3037 = vmatmul.mubr.msk.f32.vlgmr.msra.gmra.mrb[12].mxu0 %vm849_vm10, %v596_v3  ;;  %3059 = vmatmul.mubr.msk.f32.vlgmr.msra.gmra.mrb[12].mxu1 %vm849_vm10, %v596_v3  ;;  %v2876_v9 = vpop.f32.mrb[7].mxu0 }
 0x198   : > { %3314 = vmatpush3.bf16.msra.mxu0 %v3680_v55  ;;  %3326 = vmatpush3.bf16.msra.mxu1 %v3627_v42 }
 0x199   : > { %3315 = vmatprep.subr.bf16.mxu0 %v3440_v7  ;;  %3327 = vmatprep.subr.bf16.mxu1 %v3440_v7 }
 0x19a   : > { %3047 = vmatprep.mubr.msk.f32.mxu0 %vm3441_vm0, %v3442_v13  ;;  %3069 = vmatprep.mubr.msk.f32.mxu1 %vm3441_vm0, %v3442_v13 }
 0x19b   : > { %v833_v10 = vpop.f32.mrb[6].mxu1 }
 0x19c   : > { %3317 = vmatpush3.bf16.msra.mxu0 %v3692_v60  ;;  %3329 = vmatpush3.bf16.msra.mxu1 %v3647_v47  ;;  %v2895_v11 = vpop.f32.mrb[7].mxu1 }
 0x19d   : > { %3330 = vmatprep.subr.bf16.mxu1 %v3440_v7  ;;  %3336 = vmatprep.subr.bf16.mxu0 %v3440_v7 }
 0x19f   : > { %3048 = vmatmul.mubr.msk.f32.vlgmr.msra.gmra.mrb[12].mxu0 %vm849_vm10, %v675_v5  ;;  %3070 = vmatmul.mubr.msk.f32.vlgmr.msra.gmra.mrb[12].mxu1 %vm849_vm10, %v675_v5 }
 0x1a0   : > { %3332 = vmatpush3.bf16.msra.mxu1 %v3680_v55  ;;  %3338 = vmatpush3.bf16.msra.mxu0 %v3653_v49 }
 0x1a1   : > { %3333 = vmatprep.subr.bf16.mxu1 %v3440_v7  ;;  %3339 = vmatprep.subr.bf16.mxu0 %v3440_v7 }
 0x1a2   : > { %3080 = vmatprep.mubr.msk.f32.mxu1 %vm3441_vm0, %v3442_v13  ;;  %3091 = vmatprep.mubr.msk.f32.mxu0 %vm3441_vm0, %v3442_v13 }
 0x1a4   : > { %3335 = vmatpush3.bf16.msra.mxu1 %v3692_v60  ;;  %3341 = vmatpush3.bf16.msra.mxu0 %v3666_v52 }
 0x1a5   : > { %3342 = vmatprep.subr.bf16.mxu0 %v3440_v7  ;;  %3354 = vmatprep.subr.bf16.mxu1 %v3440_v7 }
 0x1a7   : > { %3081 = vmatmul.mubr.msk.f32.vlgmr.msra.gmra.mrb[12].mxu1 %vm849_vm10, %v754_v8  ;;  %3092 = vmatmul.mubr.msk.f32.vlgmr.msra.gmra.mrb[14].mxu0 %vm849_vm10, %v675_v5 }
 0x1a8   : > { %3344 = vmatpush3.bf16.msra.mxu0 %v3627_v42  ;;  %3356 = vmatpush3.bf16.msra.mxu1 %v3653_v49 }
 0x1a9   : > { %3345 = vmatprep.subr.bf16.mxu0 %v3440_v7  ;;  %3357 = vmatprep.subr.bf16.mxu1 %v3440_v7 }
 0x1aa   : > { %3102 = vmatprep.mubr.msk.f32.mxu0 %vm3441_vm0, %v3442_v13  ;;  %3124 = vmatprep.mubr.msk.f32.mxu1 %vm3441_vm0, %v3442_v13 }
 0x1ac   : > { %3347 = vmatpush3.bf16.msra.mxu0 %v3647_v47  ;;  %3359 = vmatpush3.bf16.msra.mxu1 %v3666_v52 }
 0x1ad   : > { %3348 = vmatprep.subr.bf16.mxu0 %v3440_v7  ;;  %3360 = vmatprep.subr.bf16.mxu1 %v3440_v7 }
 0x1af   : > { %3103 = vmatmul.mubr.msk.f32.vlgmr.msra.gmra.mrb[14].mxu0 %vm849_vm10, %v754_v8  ;;  %3125 = vmatmul.mubr.msk.f32.vlgmr.msra.gmra.mrb[14].mxu1 %vm849_vm10, %v754_v8 }
 0x1b0   : > { %3350 = vmatpush3.bf16.msra.mxu0 %v3680_v55  ;;  %3362 = vmatpush3.bf16.msra.mxu1 %v3627_v42 }
 0x1b1   : > { %3351 = vmatprep.subr.bf16.mxu0 %v3440_v7  ;;  %3363 = vmatprep.subr.bf16.mxu1 %v3440_v7  ;;  %v2529_v7 = vld [vmem:[%s3845_s3] ss:$0 sm:$0xff] }
 0x1b2   : > { %3113 = vmatprep.mubr.msk.f32.mxu0 %vm3441_vm0, %v3442_v13  ;;  %3135 = vmatprep.mubr.msk.f32.mxu1 %vm3441_vm0, %v3442_v13 }
 0x1b4   : > { %3353 = vmatpush3.bf16.msra.mxu0 %v3692_v60  ;;  %3365 = vmatpush3.bf16.msra.mxu1 %v3647_v47 }
 0x1b7   : > { %3114 = vmatmul.mubr.msk.f32.vlgmr.msra.gmra.mrb[14].mxu0 %vm849_vm10, %v833_v10  ;;  %3136 = vmatmul.mubr.msk.f32.vlgmr.msra.gmra.mrb[14].mxu1 %vm849_vm10, %v833_v10 }
 0x242   : > { %v998_v12 = vpop.f32.mrb[8].mxu0 }
 0x243   : > { %v2917_v14 = vpop.f32.mrb[9].mxu0  ;;  %v3366_v16 = vadd.f32 %v2529_v7, %v998_v12 }
 0x24a   : > { %v1218_v15 = vpop.f32.mrb[8].mxu1 }
 0x24b   : > { %v3367_v17 = vadd.f32 %v2529_v7, %v1218_v15  ;;  %v2950_v18 = vpop.f32.mrb[9].mxu1 }
 0x24d   : > { %v1223_v19 = vmax.f32 %v3366_v16, %v3367_v17 }
 0x25a   : > { %v1435_v13 = vpop.f32.mrb[10].mxu0 }
 0x25b   : > { %v3368_v20 = vadd.f32 %v2529_v7, %v1435_v13  ;;  %v2983_v21 = vpop.f32.mrb[11].mxu0 }
 0x25d   : > { %v1440_v22 = vmax.f32 %v1223_v19, %v3368_v20 }
 0x262   : > { %v1652_v23 = vpop.f32.mrb[10].mxu1 }
 0x263   : > { %v3369_v24 = vadd.f32 %v2529_v7, %v1652_v23  ;;  %v3016_v25 = vpop.f32.mrb[11].mxu1 }
 0x265   : > { %v1657_v26 = vmax.f32 %v1440_v22, %v3369_v24 }
 0x272   : > { %v1869_v27 = vpop.f32.mrb[12].mxu0 }
 0x273   : > { %v3370_v28 = vadd.f32 %v2529_v7, %v1869_v27  ;;  %v3049_v29 = vpop.f32.mrb[13].mxu0 }
 0x275   : > { %v1874_v30 = vmax.f32 %v1657_v26, %v3370_v28 }
 0x27a   : > { %v2086_v31 = vpop.f32.mrb[12].mxu1 }
 0x27b   : > { %v3371_v32 = vadd.f32 %v2529_v7, %v2086_v31  ;;  %v3082_v33 = vpop.f32.mrb[13].mxu1 }
 0x27d   : > { %v2091_v34 = vmax.f32 %v1874_v30, %v3371_v32 }
 0x28a   : > { %v2303_v35 = vpop.f32.mrb[14].mxu0  ;;  %v2446_v36 = vpop.f32.mrb[14].mxu1 }
 0x28b   : > { %v3372_v37 = vadd.f32 %v2529_v7, %v2303_v35  ;;  %v3115_v38 = vpop.f32.mrb[15].mxu0  ;;  %v3137_v39 = vpop.f32.mrb[15].mxu1  ;;  %v3373_v41 = vadd.f32 %v2529_v7, %v2446_v36 }
 0x28d   : > { %v2308_v40 = vmax.f32 %v2091_v34, %v3372_v37 }
 0x28f   : > { %v2451_v42 = vmax.f32 %v2308_v40, %v3373_v41 }
 0x291   : > { %2452 = vst.msk [vmem:[%s192_s18] sm:$0xff] %vm849_vm10, %v2451_v42 }
 0x292 PF: > { %s14_s15 = sadd.s32 1, %s3436_s15  }
 0x293   : > { %p11_p4 = scmp.ge.s32.totalorder %s14_s15, 4  }
 0x295   :  { %13 = sbr.rel (!%p11_p4) target bundleno = 1 (0x1), region = 68 }

</bundles_post_ra>
